<compile_context>
chip_gen: v5e
topology: v5e:2x2
jax: 0.10.0
libtpu: 0.0.40
codegen_flags: <defaults>
</compile_context>

<pallas_src>
import functools

import jax
import jax.numpy as jnp
from jax.experimental import pallas as pl
from jax.experimental.pallas import tpu as pltpu


def _choose_tile_hw(hw: int, max_tile: int = 8192) -> int:
    """Largest multiple-of-128 divisor of hw that is <= max_tile.

    Falls back to the full extent (always legal for a BlockSpec) when hw is
    small or has no suitable divisor.
    """
    if hw <= max_tile:
        return hw
    start = max_tile - (max_tile % 128)
    for cand in range(start, 127, -128):
        if hw % cand == 0:
            return cand
    return hw


def _pan_abunstd_kernel(scal_ref,    # SMEM (4,): w1, w2, b1, b2
                        patch_ref,   # (9, T)        im2col of pan (circular), row 0 = pan
                        abun_ref,    # (E, T)
                        w_ref,       # (2*E_pad, 9)  fused [multiply; plus] conv weights
                        b_ref,       # (2*E_pad, 1)  fused biases
                        out_ref,     # (E, T)
                        *, e_num: int, e_pad: int):
    w1 = scal_ref[0]
    w2 = scal_ref[1]
    b1 = scal_ref[2]
    b2 = scal_ref[3]

    patch = patch_ref[...]                       # (9, T)
    pan = patch[0:1, :]                          # center tap == pan, (1, T)
    abun = abun_ref[...]                         # (E, T)

    # ---- fused 3x3 circular convs (1 -> 2E channels) on the MXU ----
    conv = jnp.dot(w_ref[...], patch,
                   preferred_element_type=jnp.float32) + b_ref[...]
    # LeakyReLU (PyTorch default negative_slope = 0.01)
    conv = jnp.maximum(conv, 0.01 * conv)
    mw = conv[:e_num, :]                         # multiply_weight(pan), (E, T)
    pw = conv[e_pad:e_pad + e_num, :]            # plus_weight(pan),     (E, T)

    # ---- torch.std(abun, dim=1, keepdim=True): unbiased (N-1), one pass ----
    # NOTE: e_num == 1 gives divide-by-zero -> NaN, matching PyTorch's
    # unbiased std.
    s = jnp.sum(abun, axis=0, keepdims=True)                 # (1, T)
    sq = jnp.sum(abun * abun, axis=0, keepdims=True)         # (1, T)
    var = (sq - s * s * (1.0 / e_num)) / (e_num - 1)
    std = jnp.sqrt(jnp.maximum(var, 0.0))                    # (1, T)

    # ---- gating weights (EUP path) ----
    g1 = jax.nn.sigmoid(jnp.maximum(pan - w1 * std - b1, 0.0))
    g2 = jax.nn.sigmoid(jnp.maximum(w2 * std + b2 - pan, 0.0))
    uw = g1 + g2                                             # (1, T)

    # ---- result0 + abun  (refactored: one fewer full (E,T) VPU multiply) ----
    out_ref[...] = uw * (mw * abun + pw) + abun


def pan_abunstd_forward(w1, w2, b1, b2, pan, abun, params, max_tile_hw=8192):
    """pan: (B, 1, H, W), abun: (B, E, H, W) float32 (NCHW, like PyTorch)."""
    wm, bm, wp, bp = params                     # (E,1,3,3), (E,), (E,1,3,3), (E,)
    B, _, H, W = pan.shape
    E = abun.shape[1]
    HW = H * W
    E_pad = ((E + 7) // 8) * 8                  # sublane-align each conv half

    tile_hw = _choose_tile_hw(HW, max_tile_hw)
    n_tiles = HW // tile_hw

    # ---- im2col with circular ("wrap") padding, center tap first ----
    offsets = [(0, 0)] + [(dy, dx) for dy in (-1, 0, 1) for dx in (-1, 0, 1)
                          if (dy, dx) != (0, 0)]
    pan2d = pan[:, 0].astype(jnp.float32)                    # (B, H, W)
    patches = jnp.stack([jnp.roll(pan2d, (-dy, -dx), axis=(1, 2))
                         for dy, dx in offsets], axis=1).reshape(B, 9, HW)

    abun_flat = abun.reshape(B, E, HW).astype(jnp.float32)   # (B, E, HW)

    # Permute the flat 3x3 kernel columns to match the patch ordering.
    k_order = jnp.array([(dy + 1) * 3 + (dx + 1) for dy, dx in offsets],
                        jnp.int32)

    def _prep_w(w):                              # (E,1,3,3) -> (E_pad, 9)
        w2d = w.reshape(E, 9).astype(jnp.float32)[:, k_order]
        return jnp.pad(w2d, ((0, E_pad - E), (0, 0))) if E_pad != E else w2d

    def _prep_b(b):                              # (E,) -> (E_pad, 1)
        b2d = b.reshape(E, 1).astype(jnp.float32)
        return jnp.pad(b2d, ((0, E_pad - E), (0, 0))) if E_pad != E else b2d

    w_fused = jnp.concatenate([_prep_w(wm), _prep_w(wp)], axis=0)   # (2*E_pad, 9)
    b_fused = jnp.concatenate([_prep_b(bm), _prep_b(bp)], axis=0)   # (2*E_pad, 1)

    scal = jnp.array([w1, w2, b1, b2], jnp.float32)

    kernel = functools.partial(_pan_abunstd_kernel, e_num=E, e_pad=E_pad)

    out = pl.pallas_call(
        kernel,
        out_shape=jax.ShapeDtypeStruct((B, E, HW), jnp.float32),
        grid=(B, n_tiles),
        in_specs=[
            pl.BlockSpec(memory_space=pltpu.MemorySpace.SMEM),          # scalars
            pl.BlockSpec((None, 9, tile_hw), lambda b, t: (b, 0, t)),   # patches
            pl.BlockSpec((None, E, tile_hw), lambda b, t: (b, 0, t)),   # abun
            pl.BlockSpec((2 * E_pad, 9), lambda b, t: (0, 0)),          # fused W
            pl.BlockSpec((2 * E_pad, 1), lambda b, t: (0, 0)),          # fused b
        ],
        out_specs=pl.BlockSpec((None, E, tile_hw), lambda b, t: (b, 0, t)),
        compiler_params=pltpu.CompilerParams(
            dimension_semantics=("parallel", "parallel")),
    )(scal, patches, abun_flat, w_fused, b_fused)

    return out.reshape(B, E, H, W)


def _reference(w1, w2, b1, b2, pan, abun, params):
    """Pure-JAX reference of pan_abunstd.forward (NCHW, circular padding)."""
    wm, bm, wp, bp = params

    def conv_leaky(x, w, b):  # x: (B,1,H,W), w: (E,1,3,3), b: (E,)
        xp = jnp.pad(x, ((0, 0), (0, 0), (1, 1), (1, 1)), mode="wrap")
        y = jax.lax.conv_general_dilated(
            xp, w, window_strides=(1, 1), padding="VALID",
            dimension_numbers=("NCHW", "OIHW", "NCHW"))
        y = y + b[None, :, None, None]
        return jnp.where(y >= 0, y, 0.01 * y)

    std = jnp.std(abun, axis=1, keepdims=True, ddof=1)
    sig = lambda x: 1.0 / (1.0 + jnp.exp(-x))
    uw = sig(jnp.maximum(pan - w1 * std - b1, 0.0)) \
        + sig(jnp.maximum(w2 * std + b2 - pan, 0.0))
    result0 = conv_leaky(pan, wm, bm) * uw * abun + conv_leaky(pan, wp, bp) * uw
    return result0 + abun


if __name__ == "__main__":
    B, E, H, W = 2, 30, 16, 16                  # endmember_num = 30 (module default)
    key = jax.random.PRNGKey(0)
    k1, k2, k3, k4, k5, k6 = jax.random.split(key, 6)

    # Conv2d(1, E, 3)-shaped params, PyTorch-like uniform bound 1/sqrt(fan_in)=1/3.
    bound = 1.0 / 3.0
    wm = jax.random.uniform(k1, (E, 1, 3, 3), jnp.float32, -bound, bound)
    bm = jax.random.uniform(k2, (E,), jnp.float32, -bound, bound)
    wp = jax.random.uniform(k3, (E, 1, 3, 3), jnp.float32, -bound, bound)
    bp = jax.random.uniform(k4, (E,), jnp.float32, -bound, bound)
    params = (wm, bm, wp, bp)

    pan = jax.random.uniform(k5, (B, 1, H, W), jnp.float32)
    abun = jax.random.uniform(k6, (B, E, H, W), jnp.float32)
    w1, w2, b1, b2 = 0.5, 1.5, 0.1, -0.2        # scalar gate parameters

    out = pan_abunstd_forward(w1, w2, b1, b2, pan, abun, params)
    out = jax.block_until_ready(out)

    ref = _reference(w1, w2, b1, b2, pan, abun, params)
    assert out.shape == (B, E, H, W)
    assert jnp.allclose(out, ref, atol=1e-4, rtol=1e-4), \
        float(jnp.max(jnp.abs(out - ref)))

    print("KERNEL_OK")
</pallas_src>

<mosaic_0001>
module attributes {stable_mosaic.version = 11 : i64} {
  func.func @_pan_abunstd_kernel(%arg0: i32, %arg1: i32, %arg2: memref<4xf32, #tpu.memory_space<smem>>, %arg3: memref<1x9x256xf32, #tpu.memory_space<vmem>>, %arg4: memref<1x30x256xf32, #tpu.memory_space<vmem>>, %arg5: memref<64x9xf32, #tpu.memory_space<vmem>>, %arg6: memref<64x1xf32, #tpu.memory_space<vmem>>, %arg7: memref<1x30x256xf32, #tpu.memory_space<vmem>>) attributes {dimension_semantics = [#tpu.dimension_semantics<parallel>, #tpu.dimension_semantics<parallel>], iteration_bounds = array<i64: 2, 1>, scalar_prefetch = 0 : i64, scratch_operands = 0 : i64, tpu.core_type = #tpu.core_type<tc>, window_params = [{transform_indices = @transform_0, window_bounds = array<i64: 4>}, {transform_indices = @transform_1, window_bounds = array<i64: 1, 9, 256>}, {transform_indices = @transform_2, window_bounds = array<i64: 1, 30, 256>}, {pipeline_mode = #tpu.pipeline_mode<synchronous>, transform_indices = @transform_3, window_bounds = array<i64: 64, 9>}, {pipeline_mode = #tpu.pipeline_mode<synchronous>, transform_indices = @transform_4, window_bounds = array<i64: 64, 1>}, {transform_indices = @transform_5, window_bounds = array<i64: 1, 30, 256>}]} {
    %c0 = arith.constant 0 : index
    %0 = memref.load %arg2[%c0] : memref<4xf32, #tpu.memory_space<smem>>
    %c1 = arith.constant 1 : index
    %1 = memref.load %arg2[%c1] : memref<4xf32, #tpu.memory_space<smem>>
    %c2 = arith.constant 2 : index
    %2 = memref.load %arg2[%c2] : memref<4xf32, #tpu.memory_space<smem>>
    %c3 = arith.constant 3 : index
    %3 = memref.load %arg2[%c3] : memref<4xf32, #tpu.memory_space<smem>>
    %c0_0 = arith.constant 0 : index
    %c0_1 = arith.constant 0 : index
    %c0_2 = arith.constant 0 : index
    %4 = vector.load %arg3[%c0_0, %c0_1, %c0_2] : memref<1x9x256xf32, #tpu.memory_space<vmem>>, vector<1x9x256xf32>
    %5 = vector.shape_cast %4 : vector<1x9x256xf32> to vector<9x256xf32>
    %6 = vector.extract_strided_slice %5 {offsets = [0, 0], sizes = [1, 256], strides = [1, 1]} : vector<9x256xf32> to vector<1x256xf32>
    %c0_3 = arith.constant 0 : index
    %c0_4 = arith.constant 0 : index
    %c0_5 = arith.constant 0 : index
    %7 = vector.load %arg4[%c0_3, %c0_4, %c0_5] : memref<1x30x256xf32, #tpu.memory_space<vmem>>, vector<1x30x256xf32>
    %8 = vector.shape_cast %7 : vector<1x30x256xf32> to vector<30x256xf32>
    %c0_6 = arith.constant 0 : index
    %c0_7 = arith.constant 0 : index
    %9 = vector.load %arg5[%c0_6, %c0_7] : memref<64x9xf32, #tpu.memory_space<vmem>>, vector<64x9xf32>
    %cst = arith.constant dense<0.000000e+00> : vector<64x256xf32>
    %10 = tpu.matmul %9, %5, %cst {dimension_numbers = #tpu.dot_dimension_numbers<[1], [0], [0], [1], [0, 0, 1, 1], [], []>} : vector<64x9xf32>, vector<9x256xf32>, vector<64x256xf32> -> vector<64x256xf32>
    %c0_8 = arith.constant 0 : index
    %c0_9 = arith.constant 0 : index
    %11 = vector.load %arg6[%c0_8, %c0_9] : memref<64x1xf32, #tpu.memory_space<vmem>>, vector<64x1xf32>
    %12 = vector.broadcast %11 : vector<64x1xf32> to vector<64x256xf32>
    %13 = arith.addf %10, %12 : vector<64x256xf32>
    %cst_10 = arith.constant 0.00999999977 : f32
    %14 = vector.broadcast %cst_10 : f32 to vector<64x256xf32>
    %15 = arith.mulf %14, %13 : vector<64x256xf32>
    %16 = arith.maximumf %13, %15 : vector<64x256xf32>
    %17 = vector.extract_strided_slice %16 {offsets = [0, 0], sizes = [30, 256], strides = [1, 1]} : vector<64x256xf32> to vector<30x256xf32>
    %18 = vector.extract_strided_slice %16 {offsets = [32, 0], sizes = [30, 256], strides = [1, 1]} : vector<64x256xf32> to vector<30x256xf32>
    %cst_11 = arith.constant dense<0.000000e+00> : vector<256xf32>
    %19 = vector.multi_reduction <add>, %8, %cst_11 [0] : vector<30x256xf32> to vector<256xf32>
    %20 = vector.shape_cast %19 : vector<256xf32> to vector<1x256xf32>
    %21 = arith.mulf %8, %8 : vector<30x256xf32>
    %cst_12 = arith.constant dense<0.000000e+00> : vector<256xf32>
    %22 = vector.multi_reduction <add>, %21, %cst_12 [0] : vector<30x256xf32> to vector<256xf32>
    %23 = vector.shape_cast %22 : vector<256xf32> to vector<1x256xf32>
    %24 = arith.mulf %20, %20 : vector<1x256xf32>
    %cst_13 = arith.constant 0.0333333351 : f32
    %25 = vector.broadcast %cst_13 : f32 to vector<1x256xf32>
    %26 = arith.mulf %24, %25 : vector<1x256xf32>
    %27 = arith.subf %23, %26 : vector<1x256xf32>
    %cst_14 = arith.constant 2.900000e+01 : f32
    %28 = vector.broadcast %cst_14 : f32 to vector<1x256xf32>
    %29 = arith.divf %27, %28 : vector<1x256xf32>
    %cst_15 = arith.constant 0.000000e+00 : f32
    %30 = vector.broadcast %cst_15 : f32 to vector<1x256xf32>
    %31 = arith.maximumf %29, %30 : vector<1x256xf32>
    %32 = math.sqrt %31 : vector<1x256xf32>
    %33 = vector.broadcast %0 : f32 to vector<1x256xf32>
    %34 = arith.mulf %33, %32 : vector<1x256xf32>
    %35 = arith.subf %6, %34 : vector<1x256xf32>
    %36 = vector.broadcast %2 : f32 to vector<1x256xf32>
    %37 = arith.subf %35, %36 : vector<1x256xf32>
    %cst_16 = arith.constant 0.000000e+00 : f32
    %38 = vector.broadcast %cst_16 : f32 to vector<1x256xf32>
    %39 = arith.maximumf %37, %38 : vector<1x256xf32>
    %40 = arith.negf %39 : vector<1x256xf32>
    %41 = math.exp %40 : vector<1x256xf32>
    %cst_17 = arith.constant 1.000000e+00 : f32
    %42 = vector.broadcast %cst_17 : f32 to vector<1x256xf32>
    %43 = arith.addf %42, %41 : vector<1x256xf32>
    %44 = arith.divf %42, %43 : vector<1x256xf32>
    %45 = vector.broadcast %1 : f32 to vector<1x256xf32>
    %46 = arith.mulf %45, %32 : vector<1x256xf32>
    %47 = vector.broadcast %3 : f32 to vector<1x256xf32>
    %48 = arith.addf %46, %47 : vector<1x256xf32>
    %49 = arith.subf %48, %6 : vector<1x256xf32>
    %cst_18 = arith.constant 0.000000e+00 : f32
    %50 = vector.broadcast %cst_18 : f32 to vector<1x256xf32>
    %51 = arith.maximumf %49, %50 : vector<1x256xf32>
    %52 = arith.negf %51 : vector<1x256xf32>
    %53 = math.exp %52 : vector<1x256xf32>
    %cst_19 = arith.constant 1.000000e+00 : f32
    %54 = vector.broadcast %cst_19 : f32 to vector<1x256xf32>
    %55 = arith.addf %54, %53 : vector<1x256xf32>
    %56 = arith.divf %54, %55 : vector<1x256xf32>
    %57 = arith.addf %44, %56 : vector<1x256xf32>
    %58 = arith.mulf %17, %8 : vector<30x256xf32>
    %59 = arith.addf %58, %18 : vector<30x256xf32>
    %60 = vector.broadcast %57 : vector<1x256xf32> to vector<30x256xf32>
    %61 = arith.mulf %60, %59 : vector<30x256xf32>
    %62 = arith.addf %61, %8 : vector<30x256xf32>
    %c0_20 = arith.constant 0 : index
    %c0_21 = arith.constant 0 : index
    %c0_22 = arith.constant 0 : index
    %63 = vector.load %arg7[%c0_20, %c0_21, %c0_22] : memref<1x30x256xf32, #tpu.memory_space<vmem>>, vector<1x30x256xf32>
    %64 = vector.shape_cast %63 : vector<1x30x256xf32> to vector<30x256xf32>
    %65 = vector.shape_cast %62 : vector<30x256xf32> to vector<1x30x256xf32>
    tpu.vector_store %arg7[%c0_20, %c0_21, %c0_22], %65 {strides = array<i32>} : memref<1x30x256xf32, #tpu.memory_space<vmem>>, vector<1x30x256xf32>,
    return
  }
  func.func @transform_0(%arg0: i32, %arg1: i32) -> i32 {
    %c0_i32 = arith.constant 0 : i32
    %c0_i32_0 = arith.constant 0 : i32
    return %c0_i32 : i32
  }
  func.func @transform_1(%arg0: i32, %arg1: i32) -> (i32, i32, i32) {
    %c0_i32 = arith.constant 0 : i32
    %c0_i32_0 = arith.constant 0 : i32
    return %arg0, %c0_i32, %arg1 : i32, i32, i32
  }
  func.func @transform_2(%arg0: i32, %arg1: i32) -> (i32, i32, i32) {
    %c0_i32 = arith.constant 0 : i32
    %c0_i32_0 = arith.constant 0 : i32
    return %arg0, %c0_i32, %arg1 : i32, i32, i32
  }
  func.func @transform_3(%arg0: i32, %arg1: i32) -> (i32, i32) {
    %c0_i32 = arith.constant 0 : i32
    %c0_i32_0 = arith.constant 0 : i32
    %c0_i32_1 = arith.constant 0 : i32
    return %c0_i32, %c0_i32_0 : i32, i32
  }
  func.func @transform_4(%arg0: i32, %arg1: i32) -> (i32, i32) {
    %c0_i32 = arith.constant 0 : i32
    %c0_i32_0 = arith.constant 0 : i32
    %c0_i32_1 = arith.constant 0 : i32
    return %c0_i32, %c0_i32_0 : i32, i32
  }
  func.func @transform_5(%arg0: i32, %arg1: i32) -> (i32, i32, i32) {
    %c0_i32 = arith.constant 0 : i32
    %c0_i32_0 = arith.constant 0 : i32
    return %arg0, %c0_i32, %arg1 : i32, i32, i32
  }
}

</mosaic_0001>

<bundles_post_ra>
// kernel: tpu_custom_call.1
= control target key start
LH: loop header
LB: loop body
LE: loop exit
PB: predicated region body
PF: predicated region fallthrough
CT: control target
= control target key end

     0   :  { %10 = vsyncpa [#allocation3], 0  ;;  %s1064_s18 = smov 0   ;;  %s1066_s19 = smov 0   ;;  %s1312_s0 = inlined_call_operand.vmem [shape: f32[4], index: 0, kind: input, shape index: {}]   ;;  %s1313_s1 = inlined_call_operand.vmem [shape: f32[2,9,256], index: 1, kind: input, shape index: {}]   ;;  %s1314_s2 = inlined_call_operand.vmem [shape: f32[2,30,256], index: 2, kind: input, shape index: {}]   ;;  %s1315_s3 = inlined_call_operand.vmem [shape: f32[64,9], index: 3, kind: input, shape index: {}]   ;;  %s1316_s4 = inlined_call_operand.vmem [shape: f32[64,1], index: 4, kind: input, shape index: {}]   ;;  %s1317_s5 = inlined_call_operand.vmem [shape: f32[2,30,256], index: 5, kind: output, shape index: {}]  }
   0x1   :  { %s1068_s20 = smov 0  }
   0x2 LB: > { %s879_s21 = sadd.s32 4294967295, %s1029_s20   ;;  %s28_s22 = sadd.s32 1, %s1025_s19  ;;  %s1029_s20 = sphi %s1068_s20, %s16_s20   ;;  %s1025_s19 = sphi %s1066_s19, %s1327_s19   ;;  %s1021_s18 = sphi %s1064_s18, %s1326_s18  }
   0x3   : > { %p30_p0 = scmp.ge.s32.totalorder %s28_s22, 2  ;;  %p881_p1 = scmp.ge.s32.totalorder %s1029_s20, 1 }
   0x4   : > { %p180_p2 = scmp.lt.s32.totalorder %s1029_s20, 3  ;;  %p934_p4 = scmp.eq.s32.totalorder %s879_s21, 0 }
   0x5   : > { %s1329_s22 = smov (%p30_p0, %s28_s22), 0  ;;  %s192_s25 = sshll.u32 %s1312_s0, 4  ;;  %s193_s25 = int_to_ptr.vmem [resolvable:$true] %s192_s25 }
   0x6   : > { %p181_p3 = pnand %p881_p1, %p180_p2  ;;  %s1031_s26 = smov [#allocation2]  }
   0x8   : > { %p930_p5 = pneg %p181_p3  ;;  %237 = sbr.rel (%p181_p3) target bundleno = 198 (0xc6), region = 40 }
   0xa   : > { %p931_p6 = pnand %p934_p4, %p930_p5 }
   0xc   : > { %933 = dma.vmem_to_smem (!%p931_p6), %s193_s25, 16, %s1031_s26, [#allocation3]  }
   0xd   : > { %1016 = dma.done.wait (%p934_p4), [#allocation3], 16  }
   0xe   : > { %1018 = vsyncadd (%p934_p4), [#allocation3], 4294967280 }
   0xf   : > { %244 = sfence }
  0x10   : > { %p285_p7 = scmp.lt.s32.totalorder %s1021_s18, 1  ;;  %v1032_v0 = vmov 0   ;;  %v340_v1 = vld [vmem:[%s1316_s4 + $0x10] sm:$0xff]  ;;  %v338_v2 = vld [vmem:[%s1316_s4] sm:$0xff]  ;;  %vm411_vm0 = vcmask 1040384   ;;  %v1033_v3 = vmov 29.0  }
  0x11   : > { %964 = vset.pattern.permute.xlu1 %v1032_v0  ;;  %963 = vset.pattern.permute.xlu0 %v1032_v0  ;;  %966 = vrcp.f32 %v1033_v3  ;;  %vm534_vm1 = vcmask 1045504   ;;  %v330_v27 = vld [vmem:[%s1315_s3] sm:$0xff]  ;;  %vm386_vm2 = vcmask 72704   ;;  %v341_v34 = vld [vmem:[%s1316_s4 + $0x18] sm:$0xff]  ;;  %v339_v38 = vld [vmem:[%s1316_s4 + $0x8] sm:$0xff]  ;;  %s314_s26 = sld [smem:[#allocation2]] }
  0x12   : > { %s1331_s18 = smov (!%p285_p7, %s1021_s18), 1  ;;  %358 = vperm.xlu1 %964, %v340_v1   ;;  %965 = vset.pattern.permute.xlu2 %v1032_v0  ;;  %v334_v31 = vld [vmem:[%s1315_s3 + $0x20] sm:$0xff]  ;;  %v331_v51 = vld [vmem:[%s1315_s3 + $0x8] sm:$0xff]  ;;  %v345_v55 = vld [vmem:[%s1316_s4 + $0x38] sm:$0xff]  ;;  %s892_s27 = sld [smem:[#allocation2 + $0x1]] }
  0x13   : > { %s919_s6 = sshll.u32 %s1331_s18, 5  ;;  %s920_s7 = sshll.u32 %s1331_s18, 6  ;;  %348 = vperm.xlu0 %963, %v338_v2   ;;  %v335_v53 = vld [vmem:[%s1315_s3 + $0x28] sm:$0xff]  ;;  %v344_v58 = vld [vmem:[%s1316_s4 + $0x30] sm:$0xff]  ;;  %v342_v63 = vld [vmem:[%s1316_s4 + $0x20] sm:$0xff] }
  0x14   : > { %s292_s10 = scalar_lea.vmem %s1313_s1, %s919_s6  ;;  %s302_s13 = scalar_lea.vmem %s1314_s2, %s920_s7  ;;  %368 = vperm.xlu2 %965, %v342_v63  }
  0x15   : > { %v320_v4 = vld [vmem:[%s292_s10 + $0x10] sm:$0x1]  ;;  %v1104_v5 = vld [vmem:[%s302_s13] sm:$0xff]  ;;  %v1106_v6 = vld [vmem:[%s302_s13 + $0x8] sm:$0xff]  ;;  %s894_s28 = sld [smem:[#allocation2 + $0x3]]  ;;  %s1272_s8 = scalar_lea.vmem %s1317_s5, %s920_s7 }
  0x16   : > { %v1108_v7 = vld [vmem:[%s302_s13 + $0x10] sm:$0xff]  ;;  %v1110_v8 = vld [vmem:[%s302_s13 + $0x18] sm:$0xff]  ;;  %v1112_v9 = vld [vmem:[%s302_s13 + $0x20] sm:$0xff]  ;;  %895 = vmatpush.msk.msra.mxu0 %vm411_vm0, %v320_v4  ;;  %v553_v10 = vmul.f32 %v1104_v5, %v1104_v5  ;;  %922 = vmatpush.msk.msra.mxu2 %vm411_vm0, %v320_v4  ;;  %v554_v18 = vmul.f32 %v1106_v6, %v1106_v6  ;;  %s893_s29 = sld [smem:[#allocation2 + $0x2]] }
  0x17   : > { %v1118_v11 = vld [vmem:[%s302_s13 + $0x28] sm:$0xff]  ;;  %v1120_v12 = vld [vmem:[%s302_s13 + $0x30] sm:$0x3f]  ;;  %v1122_v13 = vld [vmem:[%s302_s13 + $0x38] sm:$0x3f]  ;;  %v532_v14 = vadd.f32 %v1108_v7, %v1104_v5  ;;  %v543_v15 = vadd.f32 %v1110_v8, %v1106_v6  ;;  %v555_v16 = vmul.f32 %v1108_v7, %v1108_v7  ;;  %v556_v19 = vmul.f32 %v1110_v8, %v1110_v8  ;;  %v1150_v28 = vpop.eup %966 }
  0x18   : > { %v535_v17 = vsel %vm534_vm1, %v1120_v12, 0.0  ;;  %v557_v20 = vmul.f32 %v1112_v9, %v1112_v9  ;;  %v321_v21 = vld [vmem:[%s292_s10 + $0x18] sm:$0x1]  ;;  %v1138_v22 = vld [vmem:[%s292_s10] sm:$0xff]  ;;  %v1140_v23 = vld [vmem:[%s292_s10 + $0x8] sm:$0xff]  ;;  %v559_v26 = vmul.f32 %v1120_v12, %v1120_v12  ;;  %v545_v29 = vsel %vm534_vm1, %v1122_v13, 0.0 }
  0x19   : > { %v533_v24 = vadd.f32 %v532_v14, %v1112_v9  ;;  %v544_v25 = vadd.f32 %v543_v15, %v1118_v11  ;;  %904 = vmatpush.msk.msra.mxu1 %vm411_vm0, %v321_v21  ;;  %v561_v30 = vadd.f32 %v555_v16, %v553_v10  ;;  %924 = vmatpush.msk.msra.mxu3 %vm411_vm0, %v321_v21  ;;  %v588_v42 = vmul.f32 29.0, %v1150_v28  ;;  %v332_v14 = vld [vmem:[%s1315_s3 + $0x10] sm:$0xff] }
  0x1a   : > { %433 = vmatpush.msra.mxu0 %v1138_v22  ;;  %v563_v33 = vsel %vm534_vm1, %v559_v26, 0.0  ;;  %923 = vmatpush.msra.mxu2 %v1138_v22  ;;  %v558_v35 = vmul.f32 %v1118_v11, %v1118_v11  ;;  %v571_v37 = vadd.f32 %v556_v19, %v554_v18  ;;  %v560_v41 = vmul.f32 %v1122_v13, %v1122_v13  ;;  %v336_v16 = vld [vmem:[%s1315_s3 + $0x30] sm:$0xff] }
  0x1b   : > { %v536_v32 = vadd.f32 %v535_v17, %v533_v24  ;;  %474 = vmatpush.msra.mxu1 %v1140_v23  ;;  %v562_v36 = vadd.f32 %v561_v30, %v557_v20  ;;  %925 = vmatpush.msra.mxu3 %v1140_v23  ;;  %v546_v40 = vadd.f32 %v545_v29, %v544_v25  ;;  %v589_v50 = vsub.f32 1.0, %v588_v42  ;;  %v343_v24 = vld [vmem:[%s1316_s4 + $0x28] sm:$0xff]  ;;  %v333_v29 = vld [vmem:[%s1315_s3 + $0x18] sm:$0xff] }
  0x1c   : > { %896 = vmatmul.msk.f32.vlgmr.msra.gmra.mxu0 %vm386_vm2, %v330_v27  ;;  %900 = vmatmul.msk.f32.vlgmr.msra.gmra.mxu2 %vm386_vm2, %v334_v31  ;;  %v572_v46 = vadd.f32 %v571_v37, %v558_v35  ;;  %v573_v49 = vsel %vm534_vm1, %v560_v41, 0.0  ;;  %vm592_vm3 = vweird.f32 %v1150_v28 }
  0x1d   : > { %v537_v39 = vrot.slane %v536_v32, 4  ;;  %905 = vmatmul.msk.f32.vlgmr.msra.gmra.mxu1 %vm386_vm2, %v330_v27  ;;  %v564_v43 = vadd.f32 %v563_v33, %v562_v36  ;;  %909 = vmatmul.msk.f32.vlgmr.msra.gmra.mxu3 %vm386_vm2, %v334_v31  ;;  %v547_v48 = vrot.slane %v546_v40, 4  ;;  %v590_v61 = vmul.f32 %v1150_v28, %v589_v50 }
  0x1e   : > { %363 = vperm.xlu1 %964, %v341_v34   ;;  %353 = vperm.xlu0 %963, %v339_v38   ;;  %v574_v57 = vadd.f32 %v573_v49, %v572_v46 }
  0x1f   : > { %v538_v44 = vadd.f32 %v537_v39, %v536_v32  ;;  %v565_v45 = vrot.slane %v564_v43, 4  ;;  %v548_v60 = vadd.f32 %v547_v48, %v546_v40  ;;  %v591_v10 = vadd.f32 %v1150_v28, %v590_v61  ;;  %373 = vperm.xlu2 %965, %v343_v24  }
  0x20   : > { %v575_v2 = vrot.slane %v574_v57, 4 }
  0x21   : > { %v539_v47 = vrot.slane %v538_v44, 2  ;;  %v566_v52 = vadd.f32 %v565_v45, %v564_v43  ;;  %v549_v3 = vrot.slane %v548_v60, 2  ;;  %v593_v21 = vsel %vm592_vm3, %v1150_v28, %v591_v10  ;;  %v337_v28 = vld [vmem:[%s1315_s3 + $0x38] sm:$0xff] }
  0x22   : > { %v576_v18 = vadd.f32 %v575_v2, %v574_v57 }
  0x23   : > { %v540_v54 = vadd.f32 %v539_v47, %v538_v44  ;;  %v567_v56 = vrot.slane %v566_v52, 2  ;;  %v550_v19 = vadd.f32 %v549_v3, %v548_v60  ;;  %v670_v60 = vstv %s892_s27 }
  0x24   : > { %897 = vmatmul.msk.f32.gmra.mxu0 %vm386_vm2, %v331_v51  ;;  %901 = vmatmul.msk.f32.gmra.mxu2 %vm386_vm2, %v335_v53  ;;  %v577_v27 = vrot.slane %v576_v18, 2 }
  0x25   : > { %v541_v59 = vrot.slane %v540_v54, 1  ;;  %906 = vmatmul.msk.f32.gmra.mxu1 %vm386_vm2, %v331_v51  ;;  %v568_v62 = vadd.f32 %v567_v56, %v566_v52  ;;  %910 = vmatmul.msk.f32.gmra.mxu3 %vm386_vm2, %v335_v53  ;;  %v551_v26 = vrot.slane %v550_v19, 1 }
  0x26   : > { %383 = vperm.xlu1 %964, %v345_v55   ;;  %378 = vperm.xlu0 %963, %v344_v58   ;;  %v578_v32 = vadd.f32 %v577_v27, %v576_v18  ;;  %v622_v58 = vstv %s314_s26 }
  0x27   : > { %v542_v0 = vadd.f32 %v541_v59, %v540_v54  ;;  %v569_v1 = vrot.slane %v568_v62, 1  ;;  %v552_v31 = vadd.f32 %v551_v26, %v550_v19 }
  0x28   : > { %v579_v33 = vrot.slane %v578_v32, 1 }
  0x29   : > { %v581_v4 = vmul.f32 %v542_v0, %v542_v0  ;;  %v570_v15 = vadd.f32 %v569_v1, %v568_v62  ;;  %v582_v34 = vmul.f32 %v552_v31, %v552_v31  ;;  %v673_v0 = vstv %s894_s28 }
  0x2a   : > { %v580_v35 = vadd.f32 %v579_v33, %v578_v32 }
  0x2b   : > { %v583_v17 = vmul.f32 0.033333335, %v581_v4  ;;  %v584_v36 = vmul.f32 0.033333335, %v582_v34  ;;  %v627_v4 = vstv %s893_s29 }
  0x2c   : > { %898 = vmatmul.msk.f32.gmra.mxu0 %vm386_vm2, %v332_v14  ;;  %902 = vmatmul.msk.f32.gmra.mxu2 %vm386_vm2, %v336_v16 }
  0x2d   : > { %v585_v20 = vsub.f32 %v570_v15, %v583_v17  ;;  %907 = vmatmul.msk.f32.gmra.mxu1 %vm386_vm2, %v332_v14  ;;  %911 = vmatmul.msk.f32.gmra.mxu3 %vm386_vm2, %v336_v16  ;;  %v586_v38 = vsub.f32 %v580_v35, %v584_v36 }
  0x2f   : > { %v594_v25 = vmul.f32 %v593_v21, %v585_v20  ;;  %v595_v41 = vmul.f32 %v593_v21, %v586_v38 }
  0x31   : > { %v596_v30 = vmax.f32 %v594_v25, 0.0  ;;  %v597_v42 = vmax.f32 %v595_v41, 0.0 }
  0x33   : > { %968 = vrsqrt.f32 %v596_v30  ;;  %vm605_vm4 = vcmp.eq.f32.partialorder %v596_v30, inf  ;;  %v608_v52 = vand.u32 2147483648, %v596_v30  ;;  %vm607_vm5 = vcmp.eq.f32.partialorder %v596_v30, 0.0 }
  0x34   : > { %899 = vmatmul.msk.f32.gmra.mxu0 %vm386_vm2, %v333_v29  ;;  %903 = vmatmul.msk.f32.gmra.mxu2 %vm386_vm2, %v337_v28  ;;  %970 = vrsqrt.f32 %v597_v42  ;;  %vm617_vm6 = vcmp.eq.f32.partialorder %v597_v42, inf  ;;  %v620_v56 = vand.u32 2147483648, %v597_v42  ;;  %vm619_vm7 = vcmp.eq.f32.partialorder %v597_v42, 0.0 }
  0x35   : > { %908 = vmatmul.msk.f32.gmra.mxu1 %vm386_vm2, %v333_v29  ;;  %912 = vmatmul.msk.f32.gmra.mxu3 %vm386_vm2, %v337_v28 }
  0x39   : > { %v969_v37 = vpop.eup %968 }
  0x3a   : > { %v599_v39 = vmul.f32 %v969_v37, %v596_v30  ;;  %v971_v45 = vpop.eup %970 }
  0x3b   : > { %v611_v46 = vmul.f32 %v971_v45, %v597_v42 }
  0x3c   : > { %v600_v40 = vmul.f32 %v969_v37, %v599_v39 }
  0x3d   : > { %v612_v48 = vmul.f32 %v971_v45, %v611_v46 }
  0x3e   : > { %v601_v43 = vmul.f32 0.5, %v600_v40 }
  0x3f   : > { %v613_v49 = vmul.f32 0.5, %v612_v48 }
  0x40   : > { %v602_v44 = vsub.f32 1.5, %v601_v43 }
  0x41   : > { %v614_v51 = vsub.f32 1.5, %v613_v49 }
  0x42   : > { %v603_v47 = vmul.f32 %v969_v37, %v602_v44 }
  0x43   : > { %v615_v53 = vmul.f32 %v971_v45, %v614_v51 }
  0x44   : > { %v604_v50 = vmul.f32 %v603_v47, %v596_v30 }
  0x45   : > { %v616_v55 = vmul.f32 %v615_v53, %v597_v42 }
  0x46   : > { %v606_v54 = vsel %vm605_vm4, %v596_v30, %v604_v50 }
  0x47   : > { %v609_v57 = vsel %vm607_vm5, %v608_v52, %v606_v54  ;;  %v618_v59 = vsel %vm617_vm6, %v597_v42, %v616_v55 }
  0x48   : > { %v621_v61 = vsel %vm619_vm7, %v620_v56, %v618_v59  ;;  %v623_v62 = vmul.f32 %v622_v58, %v609_v57  ;;  %v671_v63 = vmul.f32 %v670_v60, %v609_v57 }
  0x49   : > { %v624_v1 = vmul.f32 %v622_v58, %v621_v61  ;;  %v672_v2 = vmul.f32 %v670_v60, %v621_v61 }
  0x4a   : > { %v625_v3 = vsub.f32 %v1138_v22, %v623_v62  ;;  %v674_v10 = vadd.f32 %v673_v0, %v671_v63 }
  0x4b   : > { %v626_v14 = vsub.f32 %v1140_v23, %v624_v1  ;;  %v675_v15 = vadd.f32 %v673_v0, %v672_v2 }
  0x4c   : > { %v628_v16 = vsub.f32 %v625_v3, %v627_v4  ;;  %v676_v17 = vsub.f32 %v674_v10, %v1138_v22 }
  0x4d   : > { %v629_v18 = vsub.f32 %v626_v14, %v627_v4  ;;  %v677_v19 = vsub.f32 %v675_v15, %v1140_v23 }
  0x4e   : > { %v630_v20 = vmax.f32 %v628_v16, 0.0  ;;  %v678_v21 = vmax.f32 %v676_v17, 0.0 }
  0x4f   : > { %v631_v24 = vmax.f32 %v629_v18, 0.0  ;;  %v679_v25 = vmax.f32 %v677_v19, 0.0 }
  0x50   : > { %v913_v26 = vmul.f32 -1.442695, %v630_v20  ;;  %v915_v27 = vmul.f32 -1.442695, %v678_v21 }
  0x51   : > { %v914_v29 = vmul.f32 -1.442695, %v631_v24  ;;  %v916_v28 = vmul.f32 -1.442695, %v679_v25 }
  0x52   : > { %972 = vpow2.f32 %v913_v26 }
  0x53   : > { %974 = vpow2.f32 %v915_v27 }
  0x54   : > { %976 = vpow2.f32 %v914_v29 }
  0x55   : > { %978 = vpow2.f32 %v916_v28 }
  0x58   : > { %v973_v30 = vpop.eup %972 }
  0x59   : > { %v975_v31 = vpop.eup %974  ;;  %v638_v22 = vadd.f32 1.0, %v973_v30 }
  0x5a   : > { %v977_v32 = vpop.eup %976  ;;  %v686_v34 = vadd.f32 1.0, %v975_v31 }
  0x5b   : > { %v979_v33 = vpop.eup %978  ;;  %v639_v35 = vadd.f32 1.0, %v977_v32  ;;  %980 = vrcp.f32 %v638_v22  ;;  %vm645_vm8 = vweird.f32 %v638_v22  ;;  %v651_v51 = vand.u32 2147483648, %v638_v22 }
  0x5c   : > { %v1229_v23 = vadd.f32 1.0, %v979_v33  ;;  %982 = vrcp.f32 %v686_v34  ;;  %vm693_vm10 = vweird.f32 %v686_v34  ;;  %v699_v54 = vand.u32 2147483648, %v686_v34 }
  0x5d   : > { %984 = vrcp.f32 %v639_v35  ;;  %vm660_vm12 = vweird.f32 %v639_v35  ;;  %v649_v57 = vand.u32 2147483647, %v638_v22  ;;  %v697_v60 = vand.u32 2147483647, %v686_v34 }
  0x5e   : > { %986 = vrcp.f32 %v1229_v23  ;;  %vm708_vm15 = vweird.f32 %v1229_v23  ;;  %v666_v61 = vand.u32 2147483648, %v639_v35  ;;  %v714_v62 = vand.u32 2147483648, %v1229_v23 }
  0x5f   : > { %v664_v1 = vand.u32 2147483647, %v639_v35  ;;  %v712_v3 = vand.u32 2147483647, %v1229_v23  ;;  %v652_v14 = vor.u32 1.1754944e-38, %v651_v51  ;;  %vm650_vm4 = vcmp.eq.f32.partialorder %v649_v57, 8.507059e+37 }
  0x60   : > { %v700_v19 = vor.u32 1.1754944e-38, %v699_v54  ;;  %vm698_vm5 = vcmp.eq.f32.partialorder %v697_v60, 8.507059e+37  ;;  %v667_v21 = vor.u32 1.1754944e-38, %v666_v61  ;;  %v715_v24 = vor.u32 1.1754944e-38, %v714_v62 }
  0x61   : > { %v981_v36 = vpop.eup %980  ;;  %vm665_vm6 = vcmp.eq.f32.partialorder %v664_v1, 8.507059e+37  ;;  %vm713_vm7 = vcmp.eq.f32.partialorder %v712_v3, 8.507059e+37 }
  0x62   : > { %v983_v37 = vpop.eup %982  ;;  %v641_v40 = vmul.f32 %v981_v36, %v638_v22  ;;  %vm646_vm9 = vweird.f32 %v981_v36 }
  0x63   : > { %v985_v38 = vpop.eup %984  ;;  %v689_v41 = vmul.f32 %v983_v37, %v686_v34  ;;  %vm694_vm11 = vweird.f32 %v983_v37  ;;  %vm1233_vm14 = vmor %vm645_vm8, %vm646_vm9 }
  0x64   : > { %v987_v39 = vpop.eup %986  ;;  %v656_v42 = vmul.f32 %v985_v38, %v639_v35  ;;  %v642_v44 = vsub.f32 1.0, %v641_v40  ;;  %vm661_vm13 = vweird.f32 %v985_v38  ;;  %vm1238_vm1 = vmor %vm693_vm10, %vm694_vm11 }
  0x65   : > { %v704_v43 = vmul.f32 %v987_v39, %v1229_v23  ;;  %v690_v45 = vsub.f32 1.0, %v689_v41  ;;  %vm709_vm0 = vweird.f32 %v987_v39  ;;  %vm1243_vm2 = vmor %vm660_vm12, %vm661_vm13 }
  0x66   : > { %v657_v46 = vsub.f32 1.0, %v656_v42  ;;  %v643_v48 = vmul.f32 %v981_v36, %v642_v44  ;;  %vm1250_vm3 = vmor %vm708_vm15, %vm709_vm0 }
  0x67   : > { %v705_v47 = vsub.f32 1.0, %v704_v43  ;;  %v691_v49 = vmul.f32 %v983_v37, %v690_v45 }
  0x68   : > { %v658_v50 = vmul.f32 %v985_v38, %v657_v46  ;;  %v644_v53 = vadd.f32 %v981_v36, %v643_v48 }
  0x69   : > { %v706_v52 = vmul.f32 %v987_v39, %v705_v47  ;;  %v692_v58 = vadd.f32 %v983_v37, %v691_v49 }
  0x6a   : > { %v659_v63 = vadd.f32 %v985_v38, %v658_v50  ;;  %v648_v10 = vsel %vm1233_vm14, %v981_v36, %v644_v53 }
  0x6b   : > { %v707_v2 = vadd.f32 %v987_v39, %v706_v52  ;;  %v696_v18 = vsel %vm1238_vm1, %v983_v37, %v692_v58  ;;  %v653_v30 = vsel %vm650_vm4, %v652_v14, %v648_v10 }
  0x6c   : > { %v663_v26 = vsel %vm1243_vm2, %v985_v38, %v659_v63  ;;  %v701_v31 = vsel %vm698_vm5, %v700_v19, %v696_v18 }
  0x6d   : > { %v711_v27 = vsel %vm1250_vm3, %v987_v39, %v707_v2  ;;  %v668_v32 = vsel %vm665_vm6, %v667_v21, %v663_v26  ;;  %v718_v36 = vadd.f32 %v701_v31, %v653_v30 }
  0x6e   : > { %v369_v25 = vpop.permute.xlu2 %368  ;;  %v716_v33 = vsel %vm713_vm7, %v715_v24, %v711_v27 }
  0x6f   : > { %v719_v42 = vadd.f32 %v716_v33, %v668_v32  ;;  %v1261_v50 = vperm.slane %v718_v36, 0 }
  0x71   : > { %v1264_v54 = vperm.slane %v719_v42, 0 }
  0x79   : > { %v374_v56 = vpop.permute.xlu2 %373 }
  0x84   : > { %v359_v46 = vpop.permute.xlu1 %358 }
  0x85   : > { %v349_v55 = vpop.permute.xlu0 %348 }
  0x90   : > { %v354_v22 = vpop.permute.xlu0 %353  ;;  %v364_v24 = vpop.permute.xlu1 %363 }
  0x99   : > { %v435_v4 = vpop.f32.mrf.mxu0 }
  0x9a   : > { %v436_v16 = vadd.f32 %v435_v4, %v349_v55  ;;  %v476_v17 = vpop.f32.mrf.mxu1 }
  0x9b   : > { %v477_v20 = vadd.f32 %v476_v17, %v349_v55 }
  0x9c   : > { %v500_v29 = vmul.f32 0.01, %v436_v16 }
  0x9d   : > { %v501_v28 = vmul.f32 0.01, %v477_v20 }
  0x9e   : > { %v516_v35 = vmax.f32 %v436_v16, %v500_v29 }
  0x9f   : > { %v447_v34 = vpop.f32.mrf.mxu2  ;;  %v517_v41 = vmax.f32 %v477_v20, %v501_v28  ;;  %v379_v28 = vpop.permute.xlu0 %378 }
  0xa0   : > { %v448_v23 = vadd.f32 %v447_v34, %v369_v25  ;;  %v488_v37 = vpop.f32.mrf.mxu3  ;;  %v720_v48 = vmul.f32 %v516_v35, %v1104_v5 }
  0xa1   : > { %v438_v40 = vpop.f32.mrf.mxu0  ;;  %v489_v38 = vadd.f32 %v488_v37, %v369_v25  ;;  %v721_v52 = vmul.f32 %v517_v41, %v1106_v6 }
  0xa2   : > { %v439_v43 = vadd.f32 %v438_v40, %v354_v22  ;;  %v479_v44 = vpop.f32.mrf.mxu1  ;;  %v508_v39 = vmul.f32 0.01, %v448_v23 }
  0xa3   : > { %v480_v45 = vadd.f32 %v479_v44, %v354_v22  ;;  %v509_v47 = vmul.f32 0.01, %v489_v38 }
  0xa4   : > { %v524_v49 = vmax.f32 %v448_v23, %v508_v39  ;;  %v502_v51 = vmul.f32 0.01, %v439_v43 }
  0xa5   : > { %v525_v53 = vmax.f32 %v489_v38, %v509_v47  ;;  %v503_v55 = vmul.f32 0.01, %v480_v45 }
  0xa6   : > { %v728_v57 = vadd.f32 %v720_v48, %v524_v49  ;;  %v518_v61 = vmax.f32 %v439_v43, %v502_v51  ;;  %v384_v51 = vpop.permute.xlu1 %383 }
  0xa7   : > { %v729_v58 = vadd.f32 %v721_v52, %v525_v53  ;;  %v450_v59 = vpop.f32.mrf.mxu2  ;;  %v519_v2 = vmax.f32 %v480_v45, %v503_v55 }
  0xa8   : > { %v738_v60 = vmul.f32 %v1261_v50, %v728_v57  ;;  %v451_v62 = vadd.f32 %v450_v59, %v374_v56  ;;  %v491_v63 = vpop.f32.mrf.mxu3  ;;  %v722_v19 = vmul.f32 %v518_v61, %v1108_v7 }
  0xa9   : > { %v441_v0 = vpop.f32.mrf.mxu0  ;;  %v739_v1 = vmul.f32 %v1264_v54, %v729_v58  ;;  %v492_v3 = vadd.f32 %v491_v63, %v374_v56  ;;  %v723_v25 = vmul.f32 %v519_v2, %v1110_v8 }
  0xaa   : > { %v442_v4 = vadd.f32 %v441_v0, %v359_v46  ;;  %v482_v10 = vpop.f32.mrf.mxu1  ;;  %v746_v14 = vadd.f32 %v738_v60, %v1104_v5  ;;  %v510_v15 = vmul.f32 0.01, %v451_v62 }
  0xab   : > { %v483_v16 = vadd.f32 %v482_v10, %v359_v46  ;;  %v747_v17 = vadd.f32 %v739_v1, %v1106_v6  ;;  %v511_v18 = vmul.f32 0.01, %v492_v3 }
  0xac   : > { %754 = vst [vmem:[%s1272_s8] sm:$0xff] %v746_v14  ;;  %v526_v20 = vmax.f32 %v451_v62, %v510_v15  ;;  %v504_v21 = vmul.f32 0.01, %v442_v4 }
  0xad   : > { %755 = vst [vmem:[%s1272_s8 + $0x8] sm:$0xff] %v747_v17  ;;  %v527_v26 = vmax.f32 %v492_v3, %v511_v18  ;;  %v505_v27 = vmul.f32 0.01, %v483_v16 }
  0xae   : > { %v730_v29 = vadd.f32 %v722_v19, %v526_v20  ;;  %v520_v6 = vmax.f32 %v442_v4, %v504_v21 }
  0xaf   : > { %v731_v30 = vadd.f32 %v723_v25, %v527_v26  ;;  %v453_v5 = vpop.f32.mrf.mxu2  ;;  %v521_v35 = vmax.f32 %v483_v16, %v505_v27 }
  0xb0   : > { %v740_v31 = vmul.f32 %v1261_v50, %v730_v29  ;;  %v454_v32 = vadd.f32 %v453_v5, %v379_v28  ;;  %v494_v33 = vpop.f32.mrf.mxu3  ;;  %v724_v44 = vmul.f32 %v520_v6, %v1112_v9 }
  0xb1   : > { %v444_v22 = vpop.f32.mrf.mxu0  ;;  %v741_v34 = vmul.f32 %v1264_v54, %v731_v30  ;;  %v495_v23 = vadd.f32 %v494_v33, %v379_v28  ;;  %v725_v46 = vmul.f32 %v521_v35, %v1118_v11 }
  0xb2   : > { %v445_v36 = vadd.f32 %v444_v22, %v364_v24  ;;  %v485_v37 = vpop.f32.mrf.mxu1  ;;  %v748_v40 = vadd.f32 %v740_v31, %v1108_v7  ;;  %v512_v41 = vmul.f32 0.01, %v454_v32 }
  0xb3   : > { %v486_v38 = vadd.f32 %v485_v37, %v364_v24  ;;  %v749_v42 = vadd.f32 %v741_v34, %v1110_v8  ;;  %v513_v43 = vmul.f32 0.01, %v495_v23 }
  0xb4   : > { %756 = vst [vmem:[%s1272_s8 + $0x10] sm:$0xff] %v748_v40  ;;  %v528_v39 = vmax.f32 %v454_v32, %v512_v41  ;;  %v506_v45 = vmul.f32 0.01, %v445_v36 }
  0xb5   : > { %757 = vst [vmem:[%s1272_s8 + $0x18] sm:$0xff] %v749_v42  ;;  %v529_v47 = vmax.f32 %v495_v23, %v513_v43  ;;  %v507_v48 = vmul.f32 0.01, %v486_v38 }
  0xb6   : > { %v732_v49 = vadd.f32 %v724_v44, %v528_v39  ;;  %v522_v8 = vmax.f32 %v445_v36, %v506_v45 }
  0xb7   : > { %v733_v52 = vadd.f32 %v725_v46, %v529_v47  ;;  %v456_v7 = vpop.f32.mrf.mxu2  ;;  %v523_v58 = vmax.f32 %v486_v38, %v507_v48 }
  0xb8   : > { %v742_v53 = vmul.f32 %v1261_v50, %v732_v49  ;;  %v457_v55 = vadd.f32 %v456_v7, %v384_v51  ;;  %v497_v56 = vpop.f32.mrf.mxu3  ;;  %v726_v0 = vmul.f32 %v522_v8, %v1120_v12 }
  0xb9   : > { %v743_v57 = vmul.f32 %v1264_v54, %v733_v52  ;;  %v498_v59 = vadd.f32 %v497_v56, %v384_v51  ;;  %v727_v2 = vmul.f32 %v523_v58, %v1122_v13 }
  0xba   : > { %v750_v60 = vadd.f32 %v742_v53, %v1112_v9  ;;  %v514_v61 = vmul.f32 0.01, %v457_v55 }
  0xbb   : > { %v751_v62 = vadd.f32 %v743_v57, %v1118_v11  ;;  %v515_v63 = vmul.f32 0.01, %v498_v59 }
  0xbc   : > { %758 = vst [vmem:[%s1272_s8 + $0x20] sm:$0xff] %v750_v60  ;;  %v530_v1 = vmax.f32 %v457_v55, %v514_v61 }
  0xbd   : > { %759 = vst [vmem:[%s1272_s8 + $0x28] sm:$0xff] %v751_v62  ;;  %v531_v3 = vmax.f32 %v498_v59, %v515_v63 }
  0xbe   : > { %v734_v4 = vadd.f32 %v726_v0, %v530_v1 }
  0xbf   : > { %v735_v10 = vadd.f32 %v727_v2, %v531_v3 }
  0xc0   : > { %v744_v14 = vmul.f32 %v1261_v50, %v734_v4 }
  0xc1   : > { %v745_v9 = vmul.f32 %v1264_v54, %v735_v10 }
  0xc2   : > { %v752_v15 = vadd.f32 %v744_v14, %v1120_v12 }
  0xc3   : > { %v753_v16 = vadd.f32 %v745_v9, %v1122_v13 }
  0xc4   : > { %760 = vst [vmem:[%s1272_s8 + $0x30] sm:$0x3f] %v752_v15 }
  0xc5   : > { %761 = vst [vmem:[%s1272_s8 + $0x38] sm:$0x3f] %v753_v16 }
  0xc6 PF: > { %s16_s20 = sadd.s32 1, %s1029_s20   ;;  %s1326_s18 = smov %s1025_s19 }
  0xc7   : > { %p13_p8 = scmp.ge.s32.totalorder %s16_s20, 4   ;;  %s1327_s19 = smov %s1329_s22 }
  0xc9   :  { %15 = sbr.rel (!%p13_p8) target bundleno = 2 (0x2), region = 78 }
  0xce   :  { %792 = vsyncpa [#allocation3], 1 }
  0xcf   :  { %794 = vsyncpa [#allocation3 + $0x1], 1 }

</bundles_post_ra>
